<compile_context>
chip_gen: v5e
topology: v5e:2x2
jax: 0.10.0
libtpu: 0.0.40
codegen_flags: <defaults>
</compile_context>

<pallas_src>
import math
from functools import partial

import numpy as np
import jax
import jax.numpy as jnp
from jax.experimental import pallas as pl
from jax.experimental.pallas import tpu as pltpu


# Largest H*W for which the fused kron(C_H, C_W) operator is used: (HW)^2 * 4B =
# 4 MiB f32 (2 MiB bf16) single-buffered — fits every chip's scoped-VMEM default
# together with the double-buffered row blocks.
_KRON_MAX_HW = 1024
_TARGET_ROWS = 256   # M-tile target: multiple of 8 sublanes, fills v6e/v7x MXU rows
_MAX_COL_TILE = 512  # lane tile for column-blocked left matmuls (multiple of 128)


def _dct_matrix(n: int) -> np.ndarray:
    """DCT-II matrix matching the PyTorch reference with norm=None:
       C[k, m] = 2 * cos(pi * (2m + 1) * k / (2n))."""
    m = np.arange(n, dtype=np.float64)
    k = np.arange(n, dtype=np.float64)
    mat = 2.0 * np.cos(np.pi * (2.0 * m[None, :] + 1.0) * k[:, None] / (2.0 * n))
    return mat.astype(np.float32)


def _round_up(a: int, b: int) -> int:
    return -(-a // b) * b


def _row_blocking(num_groups: int, rows_per_group: int, target_rows: int = _TARGET_ROWS):
    """Rows per grid step for group-structured row blocking.  Blocks hold whole
    groups (so left block-diagonal operators can be applied in-block); the row count
    targets ~target_rows and stays a multiple of 8 (sublanes) whenever the grid has
    more than one step."""
    g_blk = max(1, min(num_groups, max(1, target_rows // rows_per_group)))
    padded_groups = _round_up(num_groups, g_blk)
    n_steps = padded_groups // g_blk
    if n_steps > 1 and (g_blk * rows_per_group) % 8 != 0:
        g_blk = _round_up(g_blk, 8 // math.gcd(rows_per_group, 8))
        padded_groups = _round_up(num_groups, g_blk)
        n_steps = padded_groups // g_blk
    return g_blk, padded_groups, n_steps, g_blk * rows_per_group


# ----------------------------------------------------------------------------- kernels
def _dct3d_fused_kernel(x_ref, m2t_ref, ccg_ref, o_ref):
    # x_ref  : (TB, HW)  TB rows = whole channel groups of a batch slice
    # m2t_ref: (HW, HW)  kron(C_H, C_W)^T   (grid-invariant, single-buffered)
    # ccg_ref: (TB, TB)  kron(I_G, C_C)     (grid-invariant, single-buffered)
    t = jnp.dot(x_ref[...], m2t_ref[...], preferred_element_type=jnp.float32)
    # Keep MXU operands in the compute dtype (bf16 on v6e/v7x); accumulate in f32.
    t = t.astype(x_ref.dtype)
    o = jnp.dot(ccg_ref[...], t, preferred_element_type=jnp.float32)
    o_ref[...] = o.astype(o_ref.dtype)


def _right_matmul_kernel(x_ref, mt_ref, o_ref):
    # x_ref: (TB, L); mt_ref: (L, L) = C_L^T  ->  o = x @ C_L^T
    o_ref[...] = jnp.dot(x_ref[...], mt_ref[...],
                         preferred_element_type=jnp.float32).astype(o_ref.dtype)


def _left_matmul_kernel(l_ref, x_ref, o_ref):
    # l_ref: (TB, TB) block-diagonal operator (grid-invariant); x_ref: (TB, CT)
    o_ref[...] = jnp.dot(l_ref[...], x_ref[...],
                         preferred_element_type=jnp.float32).astype(o_ref.dtype)


# ---------------------------------------------------------------------------- wrappers
def _dct3d_kron(x, cc, ch, cw, compute_dtype):
    """Fused path for small H*W: one (HW,HW) spatial operator + block-diagonal
    channel operator, both applied to ~256-row blocks of the (N*C, HW) matrix."""
    n, c, h, w = x.shape
    hw = h * w
    g_blk, padded_groups, n_steps, tb = _row_blocking(n, c)

    m2t = np.kron(ch, cw).T.astype(compute_dtype)                               # (HW, HW)
    ccg = np.kron(np.eye(g_blk, dtype=np.float32), cc).astype(compute_dtype)    # (TB, TB)

    x2 = x.reshape(n * c, hw).astype(compute_dtype)
    rows = padded_groups * c
    if rows != n * c:  # pad with zero batch elements so row blocks divide evenly
        x2 = jnp.pad(x2, ((0, rows - n * c), (0, 0)))

    out = pl.pallas_call(
        _dct3d_fused_kernel,
        out_shape=jax.ShapeDtypeStruct((rows, hw), x.dtype),
        grid=(n_steps,),
        in_specs=[
            pl.BlockSpec((tb, hw), lambda i: (i, 0)),
            pl.BlockSpec((hw, hw), lambda i: (0, 0), pipeline_mode=pl.Buffered(1)),
            pl.BlockSpec((tb, tb), lambda i: (0, 0), pipeline_mode=pl.Buffered(1)),
        ],
        out_specs=pl.BlockSpec((tb, hw), lambda i: (i, 0)),
        compiler_params=pltpu.CompilerParams(dimension_semantics=("parallel",)),
    )(x2, m2t, ccg)

    return out[: n * c].reshape(n, c, h, w)


def _apply_right(x2, mt, out_dtype, target_rows=_TARGET_ROWS):
    """o = x2 @ mt applied to a 2-D (rows, L) view, blocking rows at ~target_rows."""
    rows, l = x2.shape
    if rows <= 2 * target_rows:
        tb, padded = rows, rows
    else:
        tb = target_rows
        padded = _round_up(rows, tb)
    if padded != rows:
        x2 = jnp.pad(x2, ((0, padded - rows), (0, 0)))

    out = pl.pallas_call(
        _right_matmul_kernel,
        out_shape=jax.ShapeDtypeStruct((padded, l), out_dtype),
        grid=(padded // tb,),
        in_specs=[
            pl.BlockSpec((tb, l), lambda i: (i, 0)),
            pl.BlockSpec((l, l), lambda i: (0, 0), pipeline_mode=pl.Buffered(1)),
        ],
        out_specs=pl.BlockSpec((tb, l), lambda i: (i, 0)),
        compiler_params=pltpu.CompilerParams(dimension_semantics=("parallel",)),
    )(x2, mt)
    return out[:rows]


def _apply_left_blockdiag(x2, op_block, num_groups, out_dtype,
                          target_rows=_TARGET_ROWS, max_col_tile=_MAX_COL_TILE):
    """o = kron(I_num_groups, op_block) @ x2, where x2 is (num_groups*g, ncols) and
    op_block is a (g, g) numpy matrix.  Row blocks hold whole groups; columns are
    tiled lane-dense.  This applies a DCT along a *leading* axis of a row-major view
    without any HBM transpose."""
    rows, ncols = x2.shape
    g = op_block.shape[0]
    g_blk, padded_groups, n_row_steps, tb = _row_blocking(num_groups, g, target_rows)
    padded_rows = padded_groups * g
    if padded_rows != rows:
        x2 = jnp.pad(x2, ((0, padded_rows - rows), (0, 0)))

    lop = np.kron(np.eye(g_blk, dtype=np.float32), op_block).astype(x2.dtype)   # (TB, TB)

    if ncols <= 4 * max_col_tile:
        col_tile, n_col_steps = ncols, 1
    else:
        col_tile = max_col_tile                       # multiple of 128 -> legal tiling
        n_col_steps = pl.cdiv(ncols, col_tile)        # partial last block is masked

    out = pl.pallas_call(
        _left_matmul_kernel,
        out_shape=jax.ShapeDtypeStruct((padded_rows, ncols), out_dtype),
        grid=(n_row_steps, n_col_steps),
        in_specs=[
            pl.BlockSpec((tb, tb), lambda i, j: (0, 0), pipeline_mode=pl.Buffered(1)),
            pl.BlockSpec((tb, col_tile), lambda i, j: (i, j)),
        ],
        out_specs=pl.BlockSpec((tb, col_tile), lambda i, j: (i, j)),
        compiler_params=pltpu.CompilerParams(
            dimension_semantics=("parallel", "parallel")),
    )(lop, x2)
    return out[:rows]


def _dct3d_separable(x, cc, ch, cw, compute_dtype):
    """Separable path for large H*W: DCT along W (right matmul), then along H and C
    as left block-diagonal matmuls on the same row-major views — no HBM transposes,
    operator memory only O(H^2 + W^2 + C^2)."""
    n, c, h, w = x.shape
    dt = compute_dtype
    y = x.astype(dt)
    # 1) DCT along W: rows = N*C*H, right-multiply by C_W^T
    y = _apply_right(y.reshape(n * c * h, w), cw.T.astype(dt), dt)
    # 2) DCT along H: same (N*C*H, W) view, N*C groups of H rows, left-multiply C_H
    y = _apply_left_blockdiag(y, ch, n * c, dt)
    # 3) DCT along C: (N*C, H*W) view, N groups of C rows, left-multiply C_C
    y = _apply_left_blockdiag(y.reshape(n * c, h * w), cc, n, x.dtype)
    return y.reshape(n, c, h, w)


@partial(jax.jit, static_argnames=("compute_dtype", "spatial_mode"))
def dct_3d_pallas(x, *, compute_dtype=None, spatial_mode="auto"):
    """3-D DCT-II (norm=None) over the last three axes of an NCHW tensor
    (== DCT_2D().forward(x) in the PyTorch reference).

    compute_dtype: dtype of the MXU operands (accumulation is always f32).
      Defaults to x.dtype; pass jnp.bfloat16 on v6e/v7x for ~2x MXU throughput.
    spatial_mode: "kron" (fused (HW,HW) spatial operator, best for small H*W),
      "separable" (per-axis DCTs, required for large H*W), or "auto".
    """
    n, c, h, w = x.shape
    dt = x.dtype if compute_dtype is None else compute_dtype
    cc, ch, cw = _dct_matrix(c), _dct_matrix(h), _dct_matrix(w)
    mode = spatial_mode
    if mode == "auto":
        mode = "kron" if h * w <= _KRON_MAX_HW else "separable"
    if mode == "kron":
        return _dct3d_kron(x, cc, ch, cw, dt)
    return _dct3d_separable(x, cc, ch, cw, dt)


def dct_3d_reference(x):
    """Pure-JAX high-precision reference: separable 3-D DCT-II via einsum."""
    n, c, h, w = x.shape
    cc, ch, cw = map(jnp.asarray, (_dct_matrix(c), _dct_matrix(h), _dct_matrix(w)))
    return jnp.einsum("nabc,xa,yb,zc->nxyz", x, cc, ch, cw,
                      precision=jax.lax.Precision.HIGHEST)


if __name__ == "__main__":
    key = jax.random.PRNGKey(0)
    x = jax.random.normal(key, (2, 4, 16, 16), dtype=jnp.float32)

    ref = jax.block_until_ready(dct_3d_reference(x))
    scale = float(jnp.max(jnp.abs(ref)))

    # 1) default path: fused kron spatial operator, f32 operands, f32 accumulation
    out = jax.block_until_ready(dct_3d_pallas(x))
    assert out.shape == x.shape and out.dtype == x.dtype
    err = float(jnp.max(jnp.abs(out - ref))) / scale
    assert err < 1e-2, f"kron/f32 relative error too large: {err}"

    # 2) separable path (auto-selected for large H*W; exercised here for coverage)
    out_sep = jax.block_until_ready(dct_3d_pallas(x, spatial_mode="separable"))
    err_sep = float(jnp.max(jnp.abs(out_sep - ref))) / scale
    assert err_sep < 1e-2, f"separable/f32 relative error too large: {err_sep}"

    # 3) bf16 operands + f32 accumulation (recommended on v6e/v7x)
    out_bf = jax.block_until_ready(dct_3d_pallas(x, compute_dtype=jnp.bfloat16))
    err_bf = float(jnp.max(jnp.abs(out_bf - ref))) / scale
    assert err_bf < 5e-2, f"kron/bf16 relative error too large: {err_bf}"

    print("KERNEL_OK")
</pallas_src>

<mosaic_0001>
module attributes {stable_mosaic.version = 11 : i64} {
  func.func @_dct3d_fused_kernel(%arg0: i32, %arg1: memref<8x256xf32, #tpu.memory_space<vmem>>, %arg2: memref<256x256xf32, #tpu.memory_space<vmem>>, %arg3: memref<8x8xf32, #tpu.memory_space<vmem>>, %arg4: memref<8x256xf32, #tpu.memory_space<vmem>>) attributes {dimension_semantics = [#tpu.dimension_semantics<parallel>], iteration_bounds = array<i64: 1>, scalar_prefetch = 0 : i64, scratch_operands = 0 : i64, tpu.core_type = #tpu.core_type<tc>, window_params = [{transform_indices = @transform_0, window_bounds = array<i64: 8, 256>}, {pipeline_mode = #tpu.pipeline_mode<synchronous>, transform_indices = @transform_1, window_bounds = array<i64: 256, 256>}, {pipeline_mode = #tpu.pipeline_mode<synchronous>, transform_indices = @transform_2, window_bounds = array<i64: 8, 8>}, {transform_indices = @transform_3, window_bounds = array<i64: 8, 256>}]} {
    %c0 = arith.constant 0 : index
    %c0_0 = arith.constant 0 : index
    %0 = vector.load %arg1[%c0, %c0_0] : memref<8x256xf32, #tpu.memory_space<vmem>>, vector<8x256xf32>
    %c0_1 = arith.constant 0 : index
    %c0_2 = arith.constant 0 : index
    %1 = vector.load %arg2[%c0_1, %c0_2] : memref<256x256xf32, #tpu.memory_space<vmem>>, vector<256x256xf32>
    %cst = arith.constant dense<0.000000e+00> : vector<8x256xf32>
    %2 = tpu.matmul %0, %1, %cst {dimension_numbers = #tpu.dot_dimension_numbers<[1], [0], [0], [1], [0, 0, 1, 1], [], []>} : vector<8x256xf32>, vector<256x256xf32>, vector<8x256xf32> -> vector<8x256xf32>
    %c0_3 = arith.constant 0 : index
    %c0_4 = arith.constant 0 : index
    %3 = vector.load %arg3[%c0_3, %c0_4] : memref<8x8xf32, #tpu.memory_space<vmem>>, vector<8x8xf32>
    %cst_5 = arith.constant dense<0.000000e+00> : vector<8x256xf32>
    %4 = tpu.matmul %3, %2, %cst_5 {dimension_numbers = #tpu.dot_dimension_numbers<[1], [0], [0], [1], [0, 0, 1, 1], [], []>} : vector<8x8xf32>, vector<8x256xf32>, vector<8x256xf32> -> vector<8x256xf32>
    %c0_6 = arith.constant 0 : index
    %c0_7 = arith.constant 0 : index
    %5 = vector.load %arg4[%c0_6, %c0_7] : memref<8x256xf32, #tpu.memory_space<vmem>>, vector<8x256xf32>
    tpu.vector_store %arg4[%c0_6, %c0_7], %4 {strides = array<i32>} : memref<8x256xf32, #tpu.memory_space<vmem>>, vector<8x256xf32>,
    return
  }
  func.func @transform_0(%arg0: i32) -> (i32, i32) {
    %c0_i32 = arith.constant 0 : i32
    %c0_i32_0 = arith.constant 0 : i32
    return %arg0, %c0_i32 : i32, i32
  }
  func.func @transform_1(%arg0: i32) -> (i32, i32) {
    %c0_i32 = arith.constant 0 : i32
    %c0_i32_0 = arith.constant 0 : i32
    %c0_i32_1 = arith.constant 0 : i32
    return %c0_i32, %c0_i32_0 : i32, i32
  }
  func.func @transform_2(%arg0: i32) -> (i32, i32) {
    %c0_i32 = arith.constant 0 : i32
    %c0_i32_0 = arith.constant 0 : i32
    %c0_i32_1 = arith.constant 0 : i32
    return %c0_i32, %c0_i32_0 : i32, i32
  }
  func.func @transform_3(%arg0: i32) -> (i32, i32) {
    %c0_i32 = arith.constant 0 : i32
    %c0_i32_0 = arith.constant 0 : i32
    return %arg0, %c0_i32 : i32, i32
  }
}

</mosaic_0001>

<bundles_post_ra>
// kernel: dct_3d_pallas.1
= control target key start
LH: loop header
LB: loop body
LE: loop exit
PB: predicated region body
PF: predicated region fallthrough
CT: control target
= control target key end

     0   :  { %8 = vsyncpa [#allocation3], 0  ;;  %s259_s15 = smov [#allocation2]   ;;  %s260_s17 = smov 256   ;;  %s300_s0 = inlined_call_operand.vmem [shape: f32[8,256], index: 0, kind: input, shape index: {}]   ;;  %s301_s1 = inlined_call_operand.hbm [shape: f32[256,256], index: 1, kind: input, shape index: {}]   ;;  %s302_s2 = inlined_call_operand.vmem [shape: f32[8,8], index: 2, kind: input, shape index: {}]   ;;  %s303_s3 = inlined_call_operand.vmem [shape: f32[8,256], index: 3, kind: output, shape index: {}]  }
   0x1   :  { %s15_s14 = sshll.u32 %s301_s1, 4  ;;  %s17_s16 = sshll.u32 %s259_s15, 4  ;;  %s16_s14 = int_to_ptr.hbm [resolvable:$true] %s15_s14  ;;  %s18_s16 = int_to_ptr.vmem [resolvable:$true] %s17_s16 }
   0x2   :  { %s261_s18 = smov 16  }
   0x3   :  { %23 = dma.hbm_to_vmem [thread:$0]  %s16_s14, 8192, %s18_s16, [#allocation3], %s260_s17, %s260_s17, %s261_s18  }
   0x4   :  { %257 = dma.done.wait [#allocation3], 8192  }
   0x5   :  { %258 = vsyncadd [#allocation3], 4294959104  ;;  %v63_v0 = vld [vmem:[#allocation2 + $0xf8] sm:$0xff]  ;;  %v61_v2 = vld [vmem:[#allocation2 + $0xe8] sm:$0xff]  ;;  %vm177_vm0 = vcmask 64512  }
   0x6   :  { %v95_v1 = vld [vmem:[#allocation2 + $0x1f8] sm:$0xff]  ;;  %136 = vmatpush.msra.mxu2 %v63_v0  ;;  %v93_v3 = vld [vmem:[#allocation2 + $0x1e8] sm:$0xff]  ;;  %v62_v6 = vld [vmem:[#allocation2 + $0xf0] sm:$0xff] }
   0x7   :  { %156 = vmatpush.msra.mxu3 %v95_v1  ;;  %v59_v4 = vld [vmem:[#allocation2 + $0xd8] sm:$0xff]  ;;  %v94_v7 = vld [vmem:[#allocation2 + $0x1f0] sm:$0xff]  ;;  %v60_v8 = vld [vmem:[#allocation2 + $0xe0] sm:$0xff]  ;;  %96 = vmatpush.msra.mxu0 %v62_v6 }
   0x8   :  { %v91_v5 = vld [vmem:[#allocation2 + $0x1d8] sm:$0xff]  ;;  %137 = vmatpush.msra.mxu2 %v61_v2  ;;  %v92_v9 = vld [vmem:[#allocation2 + $0x1e0] sm:$0xff]  ;;  %116 = vmatpush.msra.mxu1 %v94_v7  ;;  %v57_v10 = vld [vmem:[#allocation2 + $0xc8] sm:$0xff] }
   0x9   :  { %157 = vmatpush.msra.mxu3 %v93_v3  ;;  %v89_v11 = vld [vmem:[#allocation2 + $0x1c8] sm:$0xff]  ;;  %v58_v12 = vld [vmem:[#allocation2 + $0xd0] sm:$0xff]  ;;  %97 = vmatpush.msra.mxu0 %v60_v8  ;;  %v55_v14 = vld [vmem:[#allocation2 + $0xb8] sm:$0xff] }
   0xa   :  { %138 = vmatpush.msra.mxu2 %v59_v4  ;;  %v90_v13 = vld [vmem:[#allocation2 + $0x1d0] sm:$0xff]  ;;  %117 = vmatpush.msra.mxu1 %v92_v9  ;;  %v87_v15 = vld [vmem:[#allocation2 + $0x1b8] sm:$0xff]  ;;  %v56_v16 = vld [vmem:[#allocation2 + $0xc0] sm:$0xff] }
   0xb   :  { %158 = vmatpush.msra.mxu3 %v91_v5  ;;  %v88_v17 = vld [vmem:[#allocation2 + $0x1c0] sm:$0xff]  ;;  %98 = vmatpush.msra.mxu0 %v58_v12  ;;  %v53_v18 = vld [vmem:[#allocation2 + $0xa8] sm:$0xff]  ;;  %v54_v20 = vld [vmem:[#allocation2 + $0xb0] sm:$0xff] }
   0xc   :  { %139 = vmatpush.msra.mxu2 %v57_v10  ;;  %118 = vmatpush.msra.mxu1 %v90_v13  ;;  %v85_v19 = vld [vmem:[#allocation2 + $0x1a8] sm:$0xff]  ;;  %v86_v21 = vld [vmem:[#allocation2 + $0x1b0] sm:$0xff]  ;;  %v51_v22 = vld [vmem:[#allocation2 + $0x98] sm:$0xff] }
   0xd   :  { %159 = vmatpush.msra.mxu3 %v89_v11  ;;  %99 = vmatpush.msra.mxu0 %v56_v16  ;;  %v83_v23 = vld [vmem:[#allocation2 + $0x198] sm:$0xff]  ;;  %v52_v24 = vld [vmem:[#allocation2 + $0xa0] sm:$0xff]  ;;  %v49_v26 = vld [vmem:[#allocation2 + $0x88] sm:$0xff] }
   0xe   :  { %140 = vmatpush.msra.mxu2 %v55_v14  ;;  %119 = vmatpush.msra.mxu1 %v88_v17  ;;  %v84_v25 = vld [vmem:[#allocation2 + $0x1a0] sm:$0xff]  ;;  %v81_v27 = vld [vmem:[#allocation2 + $0x188] sm:$0xff]  ;;  %v50_v28 = vld [vmem:[#allocation2 + $0x90] sm:$0xff] }
   0xf   :  { %160 = vmatpush.msra.mxu3 %v87_v15  ;;  %100 = vmatpush.msra.mxu0 %v54_v20  ;;  %v82_v29 = vld [vmem:[#allocation2 + $0x190] sm:$0xff]  ;;  %v47_v30 = vld [vmem:[#allocation2 + $0x78] sm:$0xff]  ;;  %v48_v32 = vld [vmem:[#allocation2 + $0x80] sm:$0xff] }
  0x10   :  { %141 = vmatpush.msra.mxu2 %v53_v18  ;;  %120 = vmatpush.msra.mxu1 %v86_v21  ;;  %v79_v31 = vld [vmem:[#allocation2 + $0x178] sm:$0xff]  ;;  %v80_v33 = vld [vmem:[#allocation2 + $0x180] sm:$0xff]  ;;  %v45_v34 = vld [vmem:[#allocation2 + $0x68] sm:$0xff] }
  0x11   :  { %161 = vmatpush.msra.mxu3 %v85_v19  ;;  %101 = vmatpush.msra.mxu0 %v52_v24  ;;  %v77_v35 = vld [vmem:[#allocation2 + $0x168] sm:$0xff]  ;;  %v46_v36 = vld [vmem:[#allocation2 + $0x70] sm:$0xff]  ;;  %v43_v38 = vld [vmem:[#allocation2 + $0x58] sm:$0xff] }
  0x12   :  { %142 = vmatpush.msra.mxu2 %v51_v22  ;;  %121 = vmatpush.msra.mxu1 %v84_v25  ;;  %v78_v37 = vld [vmem:[#allocation2 + $0x170] sm:$0xff]  ;;  %v75_v39 = vld [vmem:[#allocation2 + $0x158] sm:$0xff]  ;;  %v44_v40 = vld [vmem:[#allocation2 + $0x60] sm:$0xff] }
  0x13   :  { %162 = vmatpush.msra.mxu3 %v83_v23  ;;  %102 = vmatpush.msra.mxu0 %v50_v28  ;;  %v76_v41 = vld [vmem:[#allocation2 + $0x160] sm:$0xff]  ;;  %v41_v42 = vld [vmem:[#allocation2 + $0x48] sm:$0xff]  ;;  %v42_v44 = vld [vmem:[#allocation2 + $0x50] sm:$0xff] }
  0x14   :  { %143 = vmatpush.msra.mxu2 %v49_v26  ;;  %122 = vmatpush.msra.mxu1 %v82_v29  ;;  %v73_v43 = vld [vmem:[#allocation2 + $0x148] sm:$0xff]  ;;  %v74_v45 = vld [vmem:[#allocation2 + $0x150] sm:$0xff]  ;;  %v39_v46 = vld [vmem:[#allocation2 + $0x38] sm:$0xff] }
  0x15   :  { %163 = vmatpush.msra.mxu3 %v81_v27  ;;  %103 = vmatpush.msra.mxu0 %v48_v32  ;;  %v71_v47 = vld [vmem:[#allocation2 + $0x138] sm:$0xff]  ;;  %v40_v48 = vld [vmem:[#allocation2 + $0x40] sm:$0xff]  ;;  %v37_v50 = vld [vmem:[#allocation2 + $0x28] sm:$0xff] }
  0x16   :  { %144 = vmatpush.msra.mxu2 %v47_v30  ;;  %123 = vmatpush.msra.mxu1 %v80_v33  ;;  %v72_v49 = vld [vmem:[#allocation2 + $0x140] sm:$0xff]  ;;  %v69_v51 = vld [vmem:[#allocation2 + $0x128] sm:$0xff]  ;;  %v38_v52 = vld [vmem:[#allocation2 + $0x30] sm:$0xff] }
  0x17   :  { %164 = vmatpush.msra.mxu3 %v79_v31  ;;  %104 = vmatpush.msra.mxu0 %v46_v36  ;;  %v70_v53 = vld [vmem:[#allocation2 + $0x130] sm:$0xff]  ;;  %v35_v54 = vld [vmem:[#allocation2 + $0x18] sm:$0xff]  ;;  %v36_v56 = vld [vmem:[#allocation2 + $0x20] sm:$0xff] }
  0x18   :  { %145 = vmatpush.msra.mxu2 %v45_v34  ;;  %124 = vmatpush.msra.mxu1 %v78_v37  ;;  %v67_v55 = vld [vmem:[#allocation2 + $0x118] sm:$0xff]  ;;  %v68_v57 = vld [vmem:[#allocation2 + $0x120] sm:$0xff]  ;;  %v33_v58 = vld [vmem:[#allocation2 + $0x8] sm:$0xff] }
  0x19   :  { %165 = vmatpush.msra.mxu3 %v77_v35  ;;  %105 = vmatpush.msra.mxu0 %v44_v40  ;;  %v65_v59 = vld [vmem:[#allocation2 + $0x108] sm:$0xff]  ;;  %v30_v60 = vld [vmem:[%s300_s0] sm:$0xff]  ;;  %v34_v62 = vld [vmem:[#allocation2 + $0x10] sm:$0xff] }
  0x1a   :  { %146 = vmatpush.msra.mxu2 %v43_v38  ;;  %125 = vmatpush.msra.mxu1 %v76_v41  ;;  %v31_v61 = vld [vmem:[%s300_s0 + $0x8] sm:$0xff]  ;;  %v66_v63 = vld [vmem:[#allocation2 + $0x110] sm:$0xff]  ;;  %v32_v0 = vld [vmem:[#allocation2] sm:$0xff] }
  0x1b   :  { %166 = vmatpush.msra.mxu3 %v75_v39  ;;  %106 = vmatpush.msra.mxu0 %v42_v44  ;;  %v64_v1 = vld [vmem:[#allocation2 + $0x100] sm:$0xff] }
  0x1c   :  { %147 = vmatpush.msra.mxu2 %v41_v42  ;;  %126 = vmatpush.msra.mxu1 %v74_v45  ;;  %v176_v5 = vld [vmem:[%s302_s2] sm:$0xff] }
  0x1d   :  { %167 = vmatpush.msra.mxu3 %v73_v43  ;;  %107 = vmatpush.msra.mxu0 %v40_v48 }
  0x1e   :  { %148 = vmatpush.msra.mxu2 %v39_v46  ;;  %127 = vmatpush.msra.mxu1 %v72_v49 }
  0x1f   :  { %168 = vmatpush.msra.mxu3 %v71_v47  ;;  %108 = vmatpush.msra.mxu0 %v38_v52 }
  0x20   :  { %149 = vmatpush.msra.mxu2 %v37_v50  ;;  %128 = vmatpush.msra.mxu1 %v70_v53 }
  0x21   :  { %169 = vmatpush.msra.mxu3 %v69_v51  ;;  %109 = vmatpush.msra.mxu0 %v36_v56 }
  0x22   :  { %150 = vmatpush.msra.mxu2 %v35_v54  ;;  %129 = vmatpush.msra.mxu1 %v68_v57 }
  0x23   :  { %170 = vmatpush.msra.mxu3 %v67_v55  ;;  %110 = vmatpush.msra.mxu0 %v34_v62 }
  0x24   :  { %151 = vmatpush.msra.mxu2 %v33_v58  ;;  %130 = vmatpush.msra.mxu1 %v66_v63 }
  0x25   :  { %171 = vmatpush.msra.mxu3 %v65_v59  ;;  %152 = vmatmul.f32.vlgmr.msra.gmra.mxu2 %v30_v60 }
  0x26   :  { %172 = vmatmul.f32.vlgmr.msra.gmra.mxu3 %v31_v61  ;;  %111 = vmatpush.msra.mxu0 %v32_v0 }
  0x27   :  { %131 = vmatpush.msra.mxu1 %v64_v1  ;;  %112 = vmatmul.f32.vlgmr.msra.gmra.mxu0 %v30_v60 }
  0x28   :  { %132 = vmatmul.f32.vlgmr.msra.gmra.mxu1 %v31_v61 }
  0xa4   :  { %v113_v2 = vpop.f32.mrf.mxu0 }
  0xa5   :  { %v133_v3 = vpop.f32.mrf.mxu1 }
  0xa6   :  { %v134_v4 = vadd.f32 %v133_v3, %v113_v2 }
  0xa8   :  { %v153_v6 = vpop.f32.mrf.mxu2  ;;  %196 = vmatpush.msrb.mxu0 %v134_v4 }
  0xa9   :  { %v173_v7 = vpop.f32.mrf.mxu3  ;;  %228 = vmatmul.msk.f32.vlgmr.msrb.gmra.mxu0 %vm177_vm0, %v176_v5 }
  0xaa   :  { %v174_v8 = vadd.f32 %v173_v7, %v153_v6 }
  0xac   :  { %216 = vmatpush.msrb.mxu1 %v174_v8 }
  0xad   :  { %229 = vmatmul.msk.f32.vlgmr.msrb.gmra.mxu1 %vm177_vm0, %v176_v5 }
 0x126   :  { %v198_v9 = vpop.f32.mrf.mxu0 }
 0x127   :  { %221 = vst [vmem:[%s303_s3] sm:$0xff] %v198_v9 }
 0x12a   :  { %v218_v10 = vpop.f32.mrf.mxu1 }
 0x12b   :  { %222 = vst [vmem:[%s303_s3 + $0x8] sm:$0xff] %v218_v10 }
 0x12c   :  { %227 = vsyncpa [#allocation3], 1 }

</bundles_post_ra>
